<compile_context>
chip_gen: v6e
topology: v6e:2x2x1
jax: 0.10.0
libtpu: 0.0.40
codegen_flags: <defaults>
</compile_context>

<pallas_src>
import functools

import jax
import jax.numpy as jnp
from jax.experimental import pallas as pl
from jax.experimental.pallas import tpu as pltpu

_LANES = 128
_SUBLANES = 8
_LOG_CLAMP = -100.0          # PyTorch BCELoss clamps log terms at -100
_MAX_BLOCK_ROWS = 512        # 512x128 f32 x 2 operands x 2 buffers = 2 MiB VMEM


# ------------------------------- kernel --------------------------------------
def _wbce_kernel(p_ref, t_ref, o_ref, acc_ref, *, n_valid, weight_fp,
                 weight_fn, block_rows):
    """p_ref/t_ref: [block_rows, 128] f32 VMEM tiles (lane-dense, padded).
       o_ref: [1, 1] f32 in SMEM (scalar loss).
       acc_ref: SMEM (2,) f32 running sums (bce_sum, weight_sum)."""
    step = pl.program_id(0)

    @pl.when(step == 0)
    def _():
        acc_ref[0] = 0.0
        acc_ref[1] = 0.0

    p = p_ref[...]
    t = t_ref[...]
    rows, lanes = p.shape

    # Mask off padding elements (n_valid is a compile-time constant).
    base = step * (block_rows * _LANES)
    flat_idx = base + (
        jax.lax.broadcasted_iota(jnp.int32, (rows, lanes), 0) * lanes
        + jax.lax.broadcasted_iota(jnp.int32, (rows, lanes), 1))
    valid = flat_idx < n_valid

    # Elementwise BCE with PyTorch's -100 log clamp (logs go to the EUP).
    log_p = jnp.maximum(jnp.log(p), _LOG_CLAMP)
    log_1mp = jnp.maximum(jnp.log(1.0 - p), _LOG_CLAMP)
    bce_el = -(t * log_p + (1.0 - t) * log_1mp)
    # Elementwise FP/FN weighting factor.
    w_el = t * weight_fn + (1.0 - t) * weight_fp

    zero = jnp.zeros_like(bce_el)
    acc_ref[0] += jnp.sum(jnp.where(valid, bce_el, zero))
    acc_ref[1] += jnp.sum(jnp.where(valid, w_el, zero))

    @pl.when(step == pl.num_programs(0) - 1)
    def _():
        inv_n = 1.0 / float(n_valid)
        # loss.mean() == mean(bce_el) * mean(w_el)   (bce is a scalar in PyTorch)
        o_ref[0, 0] = (acc_ref[0] * inv_n) * (acc_ref[1] * inv_n)


# ------------------------------- wrapper --------------------------------------
@functools.partial(jax.jit, static_argnames=("weight_fp", "weight_fn"))
def weighted_bce_loss(inputs, targets, *, weight_fp=1.0, weight_fn=1.0):
    """Matches WeightedBCELoss(weight_fp, weight_fn)(inputs, targets)."""
    n = inputs.size                               # static under jit
    p = inputs.reshape(-1).astype(jnp.float32)
    t = targets.reshape(-1).astype(jnp.float32)

    # Pad to a lane-dense (rows, 128) slab, rows a multiple of the row-block.
    lane_rows = pl.cdiv(n, _LANES)
    rows = pl.cdiv(lane_rows, _SUBLANES) * _SUBLANES
    block_rows = min(_MAX_BLOCK_ROWS, rows)
    rows = pl.cdiv(rows, block_rows) * block_rows
    num_blocks = rows // block_rows

    padded = rows * _LANES
    if padded != n:
        # Pad with p=0.5, t=0; padded elements are masked out in-kernel.
        p = jnp.pad(p, (0, padded - n), constant_values=0.5)
        t = jnp.pad(t, (0, padded - n), constant_values=0.0)
    p2 = p.reshape(rows, _LANES)
    t2 = t.reshape(rows, _LANES)

    kernel = functools.partial(
        _wbce_kernel, n_valid=n, weight_fp=float(weight_fp),
        weight_fn=float(weight_fn), block_rows=block_rows)

    out = pl.pallas_call(
        kernel,
        out_shape=jax.ShapeDtypeStruct((1, 1), jnp.float32),
        grid=(num_blocks,),
        in_specs=[
            pl.BlockSpec((block_rows, _LANES), lambda i: (i, 0)),
            pl.BlockSpec((block_rows, _LANES), lambda i: (i, 0)),
        ],
        out_specs=pl.BlockSpec((1, 1), lambda i: (0, 0),
                               memory_space=pltpu.MemorySpace.SMEM),
        scratch_shapes=[pltpu.SMEM((2,), jnp.float32)],
        compiler_params=pltpu.CompilerParams(
            dimension_semantics=("arbitrary",)),
    )(p2, t2)
    return out[0, 0]


# ------------------------------ reference -------------------------------------
def _reference(inputs, targets, weight_fp, weight_fn):
    p = inputs.astype(jnp.float32)
    t = targets.astype(jnp.float32)
    bce = -jnp.mean(t * jnp.maximum(jnp.log(p), _LOG_CLAMP)
                    + (1.0 - t) * jnp.maximum(jnp.log(1.0 - p), _LOG_CLAMP))
    loss = t * weight_fn * bce + (1.0 - t) * weight_fp * bce
    return loss.mean()


# --------------------------------- main ---------------------------------------
if __name__ == "__main__":
    key = jax.random.PRNGKey(0)
    k_p, k_t, k_p2, k_t2 = jax.random.split(key, 4)

    # Shapes as the training loop implies: sigmoid classifier output [batch, 1]
    # and float {0,1} labels of the same shape (single-block grid path).
    B, C = 64, 1
    inputs = jax.nn.sigmoid(jax.random.normal(k_p, (B, C), jnp.float32))
    targets = jax.random.bernoulli(k_t, 0.3, (B, C)).astype(jnp.float32)

    loss = weighted_bce_loss(inputs, targets, weight_fp=2.0, weight_fn=3.0)
    loss = jax.block_until_ready(loss)
    ref = _reference(inputs, targets, 2.0, 3.0)
    assert loss.shape == ()
    assert jnp.allclose(loss, ref, rtol=1e-5, atol=1e-6), (float(loss), float(ref))

    # Secondary check exercising the multi-block (gridded) reduction path.
    B2, C2 = 1024, 96
    inputs2 = jax.nn.sigmoid(jax.random.normal(k_p2, (B2, C2), jnp.float32))
    targets2 = jax.random.bernoulli(k_t2, 0.3, (B2, C2)).astype(jnp.float32)
    loss2 = weighted_bce_loss(inputs2, targets2, weight_fp=0.7, weight_fn=1.5)
    loss2 = jax.block_until_ready(loss2)
    ref2 = _reference(inputs2, targets2, 0.7, 1.5)
    assert jnp.allclose(loss2, ref2, rtol=1e-4, atol=1e-6), (float(loss2), float(ref2))

    print("KERNEL_OK")
</pallas_src>

<mosaic_0001>
module attributes {stable_mosaic.version = 11 : i64} {
  func.func @_wbce_kernel(%arg0: i32, %arg1: memref<8x128xf32, #tpu.memory_space<vmem>>, %arg2: memref<8x128xf32, #tpu.memory_space<vmem>>, %arg3: memref<1x1xf32, #tpu.memory_space<smem>>, %arg4: memref<2xf32, #tpu.memory_space<smem>>) attributes {dimension_semantics = [#tpu.dimension_semantics<arbitrary>], iteration_bounds = array<i64: 1>, scalar_prefetch = 0 : i64, scratch_operands = 1 : i64, tpu.core_type = #tpu.core_type<tc>, window_params = [{transform_indices = @transform_0, window_bounds = array<i64: 8, 128>}, {transform_indices = @transform_1, window_bounds = array<i64: 8, 128>}, {transform_indices = @transform_2, window_bounds = array<i64: 1, 1>}]} {
    %c0_i32 = arith.constant 0 : i32
    %0 = arith.cmpi eq, %arg0, %c0_i32 : i32
    %1 = arith.extui %0 : i1 to i32
    %c0_i32_0 = arith.constant 0 : i32
    %2 = arith.cmpi ne, %1, %c0_i32_0 : i32
    scf.if %2 {
      %cst_19 = arith.constant 0.000000e+00 : f32
      %c0_20 = arith.constant 0 : index
      %57 = memref.load %arg4[%c0_20] : memref<2xf32, #tpu.memory_space<smem>>
      memref.store %cst_19, %arg4[%c0_20] : memref<2xf32, #tpu.memory_space<smem>>
      %cst_21 = arith.constant 0.000000e+00 : f32
      %c1_22 = arith.constant 1 : index
      %58 = memref.load %arg4[%c1_22] : memref<2xf32, #tpu.memory_space<smem>>
      memref.store %cst_21, %arg4[%c1_22] : memref<2xf32, #tpu.memory_space<smem>>
    } else {
    }
    %c0 = arith.constant 0 : index
    %c0_1 = arith.constant 0 : index
    %3 = vector.load %arg1[%c0, %c0_1] : memref<8x128xf32, #tpu.memory_space<vmem>>, vector<8x128xf32>
    %c0_2 = arith.constant 0 : index
    %c0_3 = arith.constant 0 : index
    %4 = vector.load %arg2[%c0_2, %c0_3] : memref<8x128xf32, #tpu.memory_space<vmem>>, vector<8x128xf32>
    %c1024_i32 = arith.constant 1024 : i32
    %5 = arith.muli %arg0, %c1024_i32 : i32
    %6 = tpu.iota {dimensions = array<i32: 0>} : vector<8x128xi32>
    %c128_i32 = arith.constant 128 : i32
    %7 = vector.broadcast %c128_i32 : i32 to vector<8x128xi32>
    %8 = arith.muli %6, %7 : vector<8x128xi32>
    %9 = tpu.iota {dimensions = array<i32: 1>} : vector<8x128xi32>
    %10 = arith.addi %8, %9 : vector<8x128xi32>
    %11 = vector.broadcast %5 : i32 to vector<8x128xi32>
    %12 = arith.addi %11, %10 : vector<8x128xi32>
    %c64_i32 = arith.constant 64 : i32
    %13 = vector.broadcast %c64_i32 : i32 to vector<8x128xi32>
    %14 = arith.cmpi slt, %12, %13 : vector<8x128xi32>
    %15 = math.log %3 : vector<8x128xf32>
    %cst = arith.constant -1.000000e+02 : f32
    %16 = vector.broadcast %cst : f32 to vector<8x128xf32>
    %17 = arith.maximumf %15, %16 : vector<8x128xf32>
    %cst_4 = arith.constant 1.000000e+00 : f32
    %18 = vector.broadcast %cst_4 : f32 to vector<8x128xf32>
    %19 = arith.subf %18, %3 : vector<8x128xf32>
    %20 = math.log %19 : vector<8x128xf32>
    %cst_5 = arith.constant -1.000000e+02 : f32
    %21 = vector.broadcast %cst_5 : f32 to vector<8x128xf32>
    %22 = arith.maximumf %20, %21 : vector<8x128xf32>
    %23 = arith.mulf %4, %17 : vector<8x128xf32>
    %cst_6 = arith.constant 1.000000e+00 : f32
    %24 = vector.broadcast %cst_6 : f32 to vector<8x128xf32>
    %25 = arith.subf %24, %4 : vector<8x128xf32>
    %26 = arith.mulf %25, %22 : vector<8x128xf32>
    %27 = arith.addf %23, %26 : vector<8x128xf32>
    %cst_7 = arith.constant 0.000000e+00 : f32
    %28 = vector.broadcast %cst_7 : f32 to vector<8x128xf32>
    %29 = arith.subf %28, %27 : vector<8x128xf32>
    %cst_8 = arith.constant 3.000000e+00 : f32
    %30 = vector.broadcast %cst_8 : f32 to vector<8x128xf32>
    %31 = arith.mulf %4, %30 : vector<8x128xf32>
    %cst_9 = arith.constant 1.000000e+00 : f32
    %32 = vector.broadcast %cst_9 : f32 to vector<8x128xf32>
    %33 = arith.subf %32, %4 : vector<8x128xf32>
    %cst_10 = arith.constant 2.000000e+00 : f32
    %34 = vector.broadcast %cst_10 : f32 to vector<8x128xf32>
    %35 = arith.mulf %33, %34 : vector<8x128xf32>
    %36 = arith.addf %31, %35 : vector<8x128xf32>
    %cst_11 = arith.constant 0.000000e+00 : f32
    %37 = vector.broadcast %cst_11 : f32 to vector<8x128xf32>
    %c0_12 = arith.constant 0 : index
    %38 = memref.load %arg4[%c0_12] : memref<2xf32, #tpu.memory_space<smem>>
    %39 = arith.select %14, %29, %37 : vector<8x128xi1>, vector<8x128xf32>
    %40 = vector.shape_cast %39 : vector<8x128xf32> to vector<1x8x128xf32>
    %cst_13 = arith.constant dense<0.000000e+00> : vector<1xf32>
    %41 = vector.multi_reduction <add>, %40, %cst_13 [1, 2] : vector<1x8x128xf32> to vector<1xf32>
    %42 = vector.shape_cast %41 : vector<1xf32> to vector<1x1x1xf32>
    %43 = vector.extract %42[0, 0, 0] : f32 from vector<1x1x1xf32>
    %44 = arith.addf %38, %43 : f32
    %c0_14 = arith.constant 0 : index
    %45 = memref.load %arg4[%c0_14] : memref<2xf32, #tpu.memory_space<smem>>
    memref.store %44, %arg4[%c0_14] : memref<2xf32, #tpu.memory_space<smem>>
    %c1 = arith.constant 1 : index
    %46 = memref.load %arg4[%c1] : memref<2xf32, #tpu.memory_space<smem>>
    %47 = arith.select %14, %36, %37 : vector<8x128xi1>, vector<8x128xf32>
    %48 = vector.shape_cast %47 : vector<8x128xf32> to vector<1x8x128xf32>
    %cst_15 = arith.constant dense<0.000000e+00> : vector<1xf32>
    %49 = vector.multi_reduction <add>, %48, %cst_15 [1, 2] : vector<1x8x128xf32> to vector<1xf32>
    %50 = vector.shape_cast %49 : vector<1xf32> to vector<1x1x1xf32>
    %51 = vector.extract %50[0, 0, 0] : f32 from vector<1x1x1xf32>
    %52 = arith.addf %46, %51 : f32
    %c1_16 = arith.constant 1 : index
    %53 = memref.load %arg4[%c1_16] : memref<2xf32, #tpu.memory_space<smem>>
    memref.store %52, %arg4[%c1_16] : memref<2xf32, #tpu.memory_space<smem>>
    %c0_i32_17 = arith.constant 0 : i32
    %54 = arith.cmpi eq, %arg0, %c0_i32_17 : i32
    %55 = arith.extui %54 : i1 to i32
    %c0_i32_18 = arith.constant 0 : i32
    %56 = arith.cmpi ne, %55, %c0_i32_18 : i32
    scf.if %56 {
      %c0_19 = arith.constant 0 : index
      %57 = memref.load %arg4[%c0_19] : memref<2xf32, #tpu.memory_space<smem>>
      %cst_20 = arith.constant 1.562500e-02 : f32
      %58 = arith.mulf %57, %cst_20 : f32
      %c1_21 = arith.constant 1 : index
      %59 = memref.load %arg4[%c1_21] : memref<2xf32, #tpu.memory_space<smem>>
      %cst_22 = arith.constant 1.562500e-02 : f32
      %60 = arith.mulf %59, %cst_22 : f32
      %61 = arith.mulf %58, %60 : f32
      %c0_23 = arith.constant 0 : index
      %c0_24 = arith.constant 0 : index
      %62 = memref.load %arg3[%c0_23, %c0_24] : memref<1x1xf32, #tpu.memory_space<smem>>
      memref.store %61, %arg3[%c0_23, %c0_24] : memref<1x1xf32, #tpu.memory_space<smem>>
    } else {
    }
    return
  }
  func.func @transform_0(%arg0: i32) -> (i32, i32) {
    %c0_i32 = arith.constant 0 : i32
    %c0_i32_0 = arith.constant 0 : i32
    return %arg0, %c0_i32 : i32, i32
  }
  func.func @transform_1(%arg0: i32) -> (i32, i32) {
    %c0_i32 = arith.constant 0 : i32
    %c0_i32_0 = arith.constant 0 : i32
    return %arg0, %c0_i32 : i32, i32
  }
  func.func @transform_2(%arg0: i32) -> (i32, i32) {
    %c0_i32 = arith.constant 0 : i32
    %c0_i32_0 = arith.constant 0 : i32
    %c0_i32_1 = arith.constant 0 : i32
    return %c0_i32, %c0_i32_0 : i32, i32
  }
}

</mosaic_0001>

<bundles_post_ra>
// kernel: weighted_bce_loss.1
= control target key start
LH: loop header
LB: loop body
LE: loop exit
PB: predicated region body
PF: predicated region fallthrough
CT: control target
= control target key end

     0   :  { %s144_s0 = inlined_call_operand.vmem [shape: f32[8,128], index: 0, kind: input, shape index: {}]   ;;  %s145_s1 = inlined_call_operand.vmem [shape: f32[8,128], index: 1, kind: input, shape index: {}]   ;;  %s146_s2 = inlined_call_operand.hbm [shape: f32[1,1], index: 2, kind: output, shape index: {}]  }
   0x1   :  { %v20_v0 = vld [vmem:[%s144_s0] sm:$0xff] }
   0x2   :  { %7 = vsyncpa [#allocation4], 0  ;;  %105 = vlog2.f32 %v20_v0  ;;  %v35_v1 = vsub.f32 1.0, %v20_v0  ;;  %v23_v2 = vlaneseq  ;;  %v21_v5 = vld [vmem:[%s145_s1] sm:$0xff]  ;;  %s119_s16 = smov [#allocation3]  }
   0x3   :  { %v40_v12 = vsub.f32 1.0, %v21_v5  ;;  %v44_v17 = vmul.f32 3.0, %v21_v5 }
   0x4   :  { %107 = vlog2.f32 %v35_v1  ;;  %v24_v3 = vshrl.u32 %v23_v2, 7  ;;  %v27_v9 = vand.u32 127, %v23_v2 }
   0x5   :  { %v45_v18 = vmul.f32 2.0, %v40_v12 }
   0x6   :  { %v25_v8 = vmul.u32 128, %v24_v3 }
   0x7   :  { %v46_v21 = vadd.f32 %v45_v18, %v44_v17 }
   0x8   :  { %v28_v15 = vadd.s32 %v27_v9, %v25_v8 }
   0xa   :  { %vm31_vm0 = vcmp.lt.s32.totalorder %v28_v15, 64 }
   0xb   :  { %v62_v23 = vsel %vm31_vm0, %v46_v21, 0.0 }
   0xf   :  { %v106_v4 = vpop.eup %105 }
  0x10   :  { %v33_v6 = vmul.f32 0.6931472, %v106_v4 }
  0x11   :  { %v108_v7 = vpop.eup %107 }
  0x12   :  { %v34_v10 = vmax.f32 %v33_v6, -100.0  ;;  %v37_v11 = vmul.f32 0.6931472, %v108_v7 }
  0x14   :  { %v38_v13 = vmax.f32 %v37_v11, -100.0  ;;  %v39_v14 = vmul.f32 %v34_v10, %v21_v5 }
  0x16   :  { %v41_v16 = vmul.f32 %v40_v12, %v38_v13 }
  0x18   :  { %v42_v19 = vadd.f32 %v41_v16, %v39_v14 }
  0x1a   :  { %v43_v20 = vsub.f32 0.0, %v42_v19 }
  0x1c   :  { %v48_v22 = vsel %vm31_vm0, %v43_v20, 0.0 }
  0x1d   :  { %49 = vadd.xlane.f32.xlu0 %v48_v22 }
  0x21   :  { %63 = vadd.xlane.f32.xlu0 %v62_v23 }
  0xa6   :  { %v50_v24 = vpop.xlane.xlu0 %49 }
  0xa7   :  { %v51_v25 = vrot.slane %v50_v24, 4 }
  0xa9   :  { %v52_v26 = vadd.f32 %v51_v25, %v50_v24 }
  0xaa   :  { %v64_v27 = vpop.xlane.xlu0 %63 }
  0xab   :  { %v53_v28 = vrot.slane %v52_v26, 2  ;;  %v65_v29 = vrot.slane %v64_v27, 4 }
  0xad   :  { %v66_v30 = vadd.f32 %v65_v29, %v64_v27  ;;  %v54_v31 = vadd.f32 %v53_v28, %v52_v26 }
  0xaf   :  { %v67_v32 = vrot.slane %v66_v30, 2  ;;  %v55_v33 = vrot.slane %v54_v31, 1 }
  0xb1   :  { %v68_v34 = vadd.f32 %v67_v32, %v66_v30  ;;  %v56_v35 = vadd.f32 %v55_v33, %v54_v31 }
  0xb3   :  { %100 = vpush %v56_v35  ;;  %v69_v36 = vrot.slane %v68_v34, 1 }
  0xb5   :  { %v70_v37 = vadd.f32 %v69_v36, %v68_v34 }
  0xb7   :  { %102 = vpush %v70_v37 }
  0xe4   :  { %s101_s0 = spop %100 }
  0xe5   :  { %s79_s1 = smul.f32 0.015625, %s101_s0 }
  0xe8   :  { %s103_s13 = spop %102 }
  0xe9   :  { %s81_s14 = smul.f32 0.015625, %s103_s13 }
  0xeb   :  { %s82_s15 = smul.f32 %s81_s14, %s79_s1 }
  0xed   :  { %84 = sst [smem:[#allocation3]] %s82_s15 }
  0xee   :  { %92 = dma.smem_to_hbm %s119_s16, 16, %s146_s2, [#allocation4]  }
  0xef   :  { %117 = dma.done.wait [#allocation4], 16  }
  0xf0   :  { %118 = vsyncadd [#allocation4], 4294967280 }
  0xf1   :  { %96 = sfence }
  0xf2   :  { %97 = vsyncpa [#allocation4], 1 }

</bundles_post_ra>
